<compile_context>
chip_gen: v5e
topology: v5e:2x2
jax: 0.10.0
libtpu: 0.0.40
codegen_flags: <defaults>
</compile_context>

<pallas_src>
import jax
import jax.numpy as jnp
from jax.experimental import pallas as pl
from jax.experimental.pallas import tpu as pltpu


def _se_kernel(x_ref, w1t_ref, shift_ref, w2t_ref, o_ref):
    # x_ref/o_ref: (Nb, C, HW) in the input dtype
    # w1t_ref: (C, E) f32 (BN scale & 1/HW folded), shift_ref: (1, E) f32,
    # w2t_ref: (E, C) f32.

    # AdaptiveAvgPool2d(1): 1/HW is folded into w1t, so a plain sum over the
    # lane axis suffices.  Accumulate in f32 (bf16 sums over large HW lose
    # precision; v5e's VPU has no bf16 anyway).
    pooled = jnp.sum(x_ref[...].astype(jnp.float32), axis=-1)      # (Nb, C)

    # Conv2d(C->E, 1x1, bias=False) with folded BN scale & 1/HW, + BN shift, ReLU.
    h = jnp.dot(pooled, w1t_ref[...],
                preferred_element_type=jnp.float32)                # (Nb, E)
    h = jnp.maximum(h + shift_ref[...], 0.0)

    # Conv2d(E->C, 1x1, bias=False)
    s = jnp.dot(h, w2t_ref[...],
                preferred_element_type=jnp.float32)                # (Nb, C)

    # Hardsigmoid: clip((s + 3) * 1/6, 0, 1)  (multiply, not divide)
    s = jnp.clip((s + 3.0) * (1.0 / 6.0), 0.0, 1.0)

    # x * se(x): re-index the ref (don't keep the tile live across the
    # matmuls), upcast per-vreg for the multiply, store in the input dtype.
    o_ref[...] = (x_ref[...].astype(jnp.float32)
                  * s[:, :, None]).astype(o_ref.dtype)


def _hw_budgets():
    """(io_buffer_budget_bytes, vmem_limit_bytes, min_grid_steps) per chip gen."""
    try:
        vmem_cap = int(pltpu.get_tpu_info().vmem_capacity_bytes)
    except Exception:
        vmem_cap = None
    if vmem_cap is not None and vmem_cap <= (64 << 20):
        # v7x-class: 64 MiB VMEM per TensorCore, 2 TCs per chip -> keep >=2
        # grid steps per core (>=4 total) so both cores pipeline.
        return 20 << 20, 48 << 20, 4
    if vmem_cap is not None:
        # v5e / v6e: 128 MiB VMEM, single TensorCore -> largest tile that fits.
        return 56 << 20, 100 << 20, 1
    # Unknown hardware: conservative (v7x-safe) defaults.
    return 20 << 20, 48 << 20, 2


def _pick_block_batch(N, C, HW, itemsize, buffer_budget_bytes, min_steps):
    """Batch rows per grid step: largest Nb whose double-buffered in+out tiles
    fit the I/O budget, keeping >= min_steps grid steps when N allows, and
    preferring an exact divisor of N (no ragged last block) unless that gives
    up more than half of the allowed tile size."""
    per_n = 4 * C * HW * itemsize          # 2 input buffers + 2 output buffers
    max_nb = max(1, buffer_budget_bytes // per_n)
    if min_steps > 1:
        max_nb = min(max_nb, max(1, -(-N // min_steps)))   # ceil(N/min_steps)
    max_nb = int(min(max_nb, N))
    best_div = 1
    for cand in range(1, max_nb + 1):
        if N % cand == 0:
            best_div = cand
    if best_div * 2 > max_nb:
        return best_div
    return max_nb                           # non-divisor: ragged last block


def se_module(x, w1, bn_gamma, bn_beta, bn_mean, bn_var, w2, eps=1e-5):
    """x: (N, C, H, W) float (f32 or bf16). Returns (N, C, H, W) in x.dtype.
    Eval-mode BatchNorm (running stats)."""
    N, C, H, W = x.shape
    E = w1.shape[0]
    HW = H * W

    # Stream x in its native dtype — no wrapper-side upcast.
    # TODO(synk): for MobileNetV3 stages with HW < 128 (7x7 / small 14x14) the
    # lane axis is sparse; folding batch/channel into the lane axis would make
    # the stores lane-dense.
    x_flat = x.reshape(N, C, HW)

    # Fold eval-mode BatchNorm and the 1/HW of the average pool into the first
    # conv weight; keep only the shift vector. Pre-transpose both weights so
    # the in-kernel matmuls need no transposes. The squeeze path stays f32.
    inv_std = 1.0 / jnp.sqrt(bn_var.astype(jnp.float32) + eps)
    gamma = bn_gamma.astype(jnp.float32)
    scale = gamma * inv_std                                             # (E,)
    shift = (bn_beta.astype(jnp.float32)
             - gamma * bn_mean.astype(jnp.float32) * inv_std).reshape(1, E)
    w1t = (w1.astype(jnp.float32) * scale[:, None] * (1.0 / HW)).T      # (C, E)
    w2t = w2.astype(jnp.float32).T                                      # (E, C)

    itemsize = jnp.dtype(x.dtype).itemsize
    io_budget, vmem_limit, min_steps = _hw_budgets()
    Nb = _pick_block_batch(N, C, HW, itemsize, io_budget, min_steps)
    grid = (pl.cdiv(N, Nb),)      # ragged last block OK: OOB writes are masked

    flops = 2 * N * C * HW + 4 * N * C * E
    bytes_accessed = 2 * N * C * HW * itemsize + (2 * C * E + E) * 4

    out_flat = pl.pallas_call(
        _se_kernel,
        out_shape=jax.ShapeDtypeStruct((N, C, HW), x.dtype),
        grid_spec=pltpu.PrefetchScalarGridSpec(
            num_scalar_prefetch=0,
            grid=grid,
            in_specs=[
                pl.BlockSpec((Nb, C, HW), lambda n: (n, 0, 0)),   # x (native dtype)
                pl.BlockSpec((C, E), lambda n: (0, 0)),           # w1t (BN+1/HW folded)
                pl.BlockSpec((1, E), lambda n: (0, 0)),           # BN shift
                pl.BlockSpec((E, C), lambda n: (0, 0)),           # w2t
            ],
            out_specs=pl.BlockSpec((Nb, C, HW), lambda n: (n, 0, 0)),
        ),
        compiler_params=pltpu.CompilerParams(
            dimension_semantics=("parallel",),
            vmem_limit_bytes=vmem_limit,
        ),
        cost_estimate=pl.CostEstimate(
            flops=flops, transcendentals=0, bytes_accessed=bytes_accessed),
    )(x_flat, w1t, shift, w2t)

    return out_flat.reshape(N, C, H, W)


def _reference(x, w1, bn_gamma, bn_beta, bn_mean, bn_var, w2, eps=1e-5):
    pooled = jnp.mean(x, axis=(2, 3), keepdims=True)                   # (N, C, 1, 1)
    h = jnp.einsum('nchw,ec->nehw', pooled, w1)                        # (N, E, 1, 1)
    inv_std = 1.0 / jnp.sqrt(bn_var + eps)
    h = (h - bn_mean[None, :, None, None]) * inv_std[None, :, None, None]
    h = h * bn_gamma[None, :, None, None] + bn_beta[None, :, None, None]
    h = jnp.maximum(h, 0.0)
    s = jnp.einsum('nehw,ce->nchw', h, w2)                             # (N, C, 1, 1)
    s = jnp.clip((s + 3.0) / 6.0, 0.0, 1.0)
    return x * s


if __name__ == "__main__":
    # SeModule(in_size=16, reduction=4) -> expand_size = max(16 // 4, 8) = 8
    N, C, H, W = 2, 16, 16, 16
    E = max(C // 4, 8)

    key = jax.random.PRNGKey(0)
    kx, kw1, kw2, kg, kb, km, kv = jax.random.split(key, 7)

    x = jax.random.normal(kx, (N, C, H, W), dtype=jnp.float32)
    # Conv2d weights (out, in, 1, 1) squeezed to (out, in)
    w1 = jax.random.normal(kw1, (E, C), dtype=jnp.float32) * 0.1
    w2 = jax.random.normal(kw2, (C, E), dtype=jnp.float32) * 0.1
    # BatchNorm2d(expand_size) parameters / running stats (eval mode)
    bn_gamma = 1.0 + 0.1 * jax.random.normal(kg, (E,), dtype=jnp.float32)
    bn_beta = 0.1 * jax.random.normal(kb, (E,), dtype=jnp.float32)
    bn_mean = 0.1 * jax.random.normal(km, (E,), dtype=jnp.float32)
    bn_var = jnp.abs(1.0 + 0.1 * jax.random.normal(kv, (E,), dtype=jnp.float32))

    ref = _reference(x, w1, bn_gamma, bn_beta, bn_mean, bn_var, w2)

    # float32 path
    out = se_module(x, w1, bn_gamma, bn_beta, bn_mean, bn_var, w2)
    out = jax.block_until_ready(out)
    assert out.shape == (N, C, H, W)
    assert out.dtype == jnp.float32
    assert jnp.allclose(out, ref, atol=1e-4, rtol=1e-4), "f32 mismatch vs reference"

    # bf16 streaming path (x stays bf16 end-to-end; gate computed in f32)
    out_bf16 = se_module(x.astype(jnp.bfloat16), w1, bn_gamma, bn_beta,
                         bn_mean, bn_var, w2)
    out_bf16 = jax.block_until_ready(out_bf16)
    assert out_bf16.shape == (N, C, H, W)
    assert out_bf16.dtype == jnp.bfloat16
    assert jnp.allclose(out_bf16.astype(jnp.float32), ref, atol=0.1, rtol=0.1), \
        "bf16 mismatch vs reference"

    print("KERNEL_OK")
</pallas_src>

<mosaic_0001>
module attributes {stable_mosaic.version = 11 : i64} {
  func.func @_se_kernel(%arg0: i32, %arg1: memref<1x16x256xf32, #tpu.memory_space<vmem>>, %arg2: memref<16x8xf32, #tpu.memory_space<vmem>>, %arg3: memref<1x8xf32, #tpu.memory_space<vmem>>, %arg4: memref<8x16xf32, #tpu.memory_space<vmem>>, %arg5: memref<1x16x256xf32, #tpu.memory_space<vmem>>) attributes {dimension_semantics = [#tpu.dimension_semantics<parallel>], iteration_bounds = array<i64: 2>, scalar_prefetch = 0 : i64, scratch_operands = 0 : i64, tpu.core_type = #tpu.core_type<tc>, window_params = [{transform_indices = @transform_0, window_bounds = array<i64: 1, 16, 256>}, {pipeline_mode = #tpu.pipeline_mode<synchronous>, transform_indices = @transform_1, window_bounds = array<i64: 16, 8>}, {pipeline_mode = #tpu.pipeline_mode<synchronous>, transform_indices = @transform_2, window_bounds = array<i64: 1, 8>}, {pipeline_mode = #tpu.pipeline_mode<synchronous>, transform_indices = @transform_3, window_bounds = array<i64: 8, 16>}, {transform_indices = @transform_4, window_bounds = array<i64: 1, 16, 256>}]} {
    %c0 = arith.constant 0 : index
    %c0_0 = arith.constant 0 : index
    %c0_1 = arith.constant 0 : index
    %0 = vector.load %arg1[%c0, %c0_0, %c0_1] : memref<1x16x256xf32, #tpu.memory_space<vmem>>, vector<1x16x256xf32>
    %cst = arith.constant dense<0.000000e+00> : vector<1x16xf32>
    %1 = vector.multi_reduction <add>, %0, %cst [2] : vector<1x16x256xf32> to vector<1x16xf32>
    %c0_2 = arith.constant 0 : index
    %c0_3 = arith.constant 0 : index
    %2 = vector.load %arg2[%c0_2, %c0_3] : memref<16x8xf32, #tpu.memory_space<vmem>>, vector<16x8xf32>
    %cst_4 = arith.constant dense<0.000000e+00> : vector<1x8xf32>
    %3 = tpu.matmul %1, %2, %cst_4 {dimension_numbers = #tpu.dot_dimension_numbers<[1], [0], [0], [1], [0, 0, 1, 1], [], []>} : vector<1x16xf32>, vector<16x8xf32>, vector<1x8xf32> -> vector<1x8xf32>
    %c0_5 = arith.constant 0 : index
    %c0_6 = arith.constant 0 : index
    %4 = vector.load %arg3[%c0_5, %c0_6] : memref<1x8xf32, #tpu.memory_space<vmem>>, vector<1x8xf32>
    %5 = arith.addf %3, %4 : vector<1x8xf32>
    %cst_7 = arith.constant 0.000000e+00 : f32
    %6 = vector.broadcast %cst_7 : f32 to vector<1x8xf32>
    %7 = arith.maximumf %5, %6 : vector<1x8xf32>
    %c0_8 = arith.constant 0 : index
    %c0_9 = arith.constant 0 : index
    %8 = vector.load %arg4[%c0_8, %c0_9] : memref<8x16xf32, #tpu.memory_space<vmem>>, vector<8x16xf32>
    %cst_10 = arith.constant dense<0.000000e+00> : vector<1x16xf32>
    %9 = tpu.matmul %7, %8, %cst_10 {dimension_numbers = #tpu.dot_dimension_numbers<[1], [0], [0], [1], [0, 0, 1, 1], [], []>} : vector<1x8xf32>, vector<8x16xf32>, vector<1x16xf32> -> vector<1x16xf32>
    %cst_11 = arith.constant 3.000000e+00 : f32
    %10 = vector.broadcast %cst_11 : f32 to vector<1x16xf32>
    %11 = arith.addf %9, %10 : vector<1x16xf32>
    %cst_12 = arith.constant 0.166666672 : f32
    %12 = vector.broadcast %cst_12 : f32 to vector<1x16xf32>
    %13 = arith.mulf %11, %12 : vector<1x16xf32>
    %cst_13 = arith.constant 0.000000e+00 : f32
    %cst_14 = arith.constant 1.000000e+00 : f32
    %14 = vector.broadcast %cst_13 : f32 to vector<1x16xf32>
    %15 = arith.maximumf %14, %13 : vector<1x16xf32>
    %16 = vector.broadcast %cst_14 : f32 to vector<1x16xf32>
    %17 = arith.minimumf %16, %15 : vector<1x16xf32>
    %c0_15 = arith.constant 0 : index
    %c0_16 = arith.constant 0 : index
    %c0_17 = arith.constant 0 : index
    %18 = vector.load %arg1[%c0_15, %c0_16, %c0_17] : memref<1x16x256xf32, #tpu.memory_space<vmem>>, vector<1x16x256xf32>
    %19 = vector.shape_cast %17 : vector<1x16xf32> to vector<1x16x1xf32>
    %20 = vector.broadcast %19 : vector<1x16x1xf32> to vector<1x16x256xf32>
    %21 = arith.mulf %18, %20 : vector<1x16x256xf32>
    %c0_18 = arith.constant 0 : index
    %c0_19 = arith.constant 0 : index
    %c0_20 = arith.constant 0 : index
    %22 = vector.load %arg5[%c0_18, %c0_19, %c0_20] : memref<1x16x256xf32, #tpu.memory_space<vmem>>, vector<1x16x256xf32>
    tpu.vector_store %arg5[%c0_18, %c0_19, %c0_20], %21 {strides = array<i32>} : memref<1x16x256xf32, #tpu.memory_space<vmem>>, vector<1x16x256xf32>,
    return
  }
  func.func @transform_0(%arg0: i32) -> (i32, i32, i32) {
    %c0_i32 = arith.constant 0 : i32
    %c0_i32_0 = arith.constant 0 : i32
    %c0_i32_1 = arith.constant 0 : i32
    return %arg0, %c0_i32, %c0_i32_0 : i32, i32, i32
  }
  func.func @transform_1(%arg0: i32) -> (i32, i32) {
    %c0_i32 = arith.constant 0 : i32
    %c0_i32_0 = arith.constant 0 : i32
    %c0_i32_1 = arith.constant 0 : i32
    return %c0_i32, %c0_i32_0 : i32, i32
  }
  func.func @transform_2(%arg0: i32) -> (i32, i32) {
    %c0_i32 = arith.constant 0 : i32
    %c0_i32_0 = arith.constant 0 : i32
    %c0_i32_1 = arith.constant 0 : i32
    return %c0_i32, %c0_i32_0 : i32, i32
  }
  func.func @transform_3(%arg0: i32) -> (i32, i32) {
    %c0_i32 = arith.constant 0 : i32
    %c0_i32_0 = arith.constant 0 : i32
    %c0_i32_1 = arith.constant 0 : i32
    return %c0_i32, %c0_i32_0 : i32, i32
  }
  func.func @transform_4(%arg0: i32) -> (i32, i32, i32) {
    %c0_i32 = arith.constant 0 : i32
    %c0_i32_0 = arith.constant 0 : i32
    %c0_i32_1 = arith.constant 0 : i32
    return %arg0, %c0_i32, %c0_i32_0 : i32, i32, i32
  }
}

</mosaic_0001>

<bundles_post_ra>
// kernel: tpu_custom_call.1
= control target key start
LH: loop header
LB: loop body
LE: loop exit
PB: predicated region body
PF: predicated region fallthrough
CT: control target
= control target key end

     0   :  { %9 = vsyncpa [#allocation3], 0  ;;  %s743_s0 = inlined_call_operand.hbm [shape: f32[2,16,256], index: 0, kind: input, shape index: {}]   ;;  %s744_s1 = inlined_call_operand.vmem [shape: f32[16,8], index: 1, kind: input, shape index: {}]   ;;  %s745_s2 = inlined_call_operand.vmem [shape: f32[1,8], index: 2, kind: input, shape index: {}]   ;;  %s746_s3 = inlined_call_operand.vmem [shape: f32[8,16], index: 3, kind: input, shape index: {}]   ;;  %s747_s4 = inlined_call_operand.hbm [shape: f32[2,16,256], index: 4, kind: output, shape index: {}]  }
   0x1   :  { %11 = vsyncpa [#allocation3 + $0x1], 0 }
   0x2   :  { %12 = vsyncpa [#allocation4], 0 }
   0x3   :  { %14 = vsyncpa [#allocation4 + $0x1], 0  ;;  %s600_s15 = smov 0   ;;  %s602_s16 = smov 0  }
   0x4   :  { %s604_s17 = smov 0   ;;  %s606_s18 = smov 0  }
   0x5 LB: > { %s621_s19 = sadd.s32 4294967295, %s569_s18   ;;  %s402_s20 = sadd.s32 4294967294, %s569_s18   ;;  %s569_s18 = sphi %s606_s18, %s757_s18   ;;  %s565_s17 = sphi %s604_s17, %s756_s17   ;;  %s561_s16 = sphi %s602_s16, %s755_s16   ;;  %s557_s15 = sphi %s600_s15, %s754_s15  }
   0x6   : > { %s625_s21 = sadd.s32 1, %s569_s18   ;;  %s27_s22 = sadd.s32 1, %s565_s17 }
   0x7   : > { %s24_s23 = ssub.s32 %s569_s18, %s625_s21  ;;  %p34_p0 = scmp.ne.s32.totalorder %s565_s17, %s561_s16 }
   0x8   : > { %p25_p1 = scmp.eq.s32.totalorder %s24_s23, 0  ;;  %p35_p2 = scmp.eq.s32.totalorder %s569_s18, 0 }
   0x9   : > { %p40_p3 = scmp.ne.s32.totalorder %s561_s16, %s557_s15  ;;  %p41_p4 = scmp.eq.s32.totalorder %s621_s19, 0 }
   0xa   : > { %s637_s24 = scalar_select %p25_p1, %s565_s17, %s27_s22  }
   0xb   : > { %p639_p5 = por %p35_p2, %p34_p0  ;;  %p643_p6 = por %p41_p4, %p40_p3 }
   0xc   : > { %p127_p7 = scmp.eq.s32.totalorder %s621_s19, 1  ;;  %p133_p8 = scmp.eq.s32.totalorder %s402_s20, 1 }
   0xd   : > { %p432_p10 = scmp.lt.s32.totalorder %s569_s18, 2  ;;  %s162_s29 = sand.u32 1, %s565_s17  }
   0xe   : > { %p650_p11 = por %p127_p7, %p34_p0  ;;  %p654_p12 = por %p133_p8, %p40_p3 }
   0xf   : > { %s418_s30 = sshll.u32 %s569_s18, 5  ;;  %s405_s5 = sshll.u32 %s162_s29, 5 }
  0x10   : > { %s171_s8 = scalar_lea.hbm %s743_s0, %s418_s30  ;;  %s166_s10 = scalar_lea.vmem [#allocation2], %s405_s5 }
  0x11   : > { %s172_s9 = sshll.u32 %s171_s8, 4  ;;  %s174_s11 = sshll.u32 %s166_s10, 4  ;;  %s173_s9 = int_to_ptr.hbm [resolvable:$true] %s172_s9  ;;  %s175_s11 = int_to_ptr.vmem [resolvable:$true] %s174_s11 }
  0x12   : > { %p665_p13 = pnand %p432_p10, %p639_p5  ;;  %p408_p0 = scmp.ge.s32.totalorder %s569_s18, 1 }
  0x13   : > { %p182_p1 = scmp.lt.s32.totalorder %s569_s18, 3  ;;  %s163_s13 = scalar_lea.sflag [#allocation3], %s162_s29 }
  0x14   : > { %s473_s14 = sshra.s32 %s173_s9, 4  ;;  %p477_p3 = pneg %p665_p13  ;;  %s474_s14 = int_to_ptr.hbm [resolvable:$true] %s473_s14 }
  0x15   : > { %s475_s20 = scalar_lea.hbm %s474_s14, 32  ;;  %s480_s25 = scalar_lea.hbm %s743_s0, 64 }
  0x16   : > { %p476_p2 = scmp.ne.s32.totalorder %s474_s14, %s475_s20  ;;  %p481_p5 = scmp.lt.s32.totalorder %s474_s14, %s743_s0 }
  0x17   : > { %p482_p8 = scmp.lt.s32.totalorder %s480_s25, %s475_s20 }
  0x18   : > { %p478_p4 = pnand %p477_p3, %p476_p2 }
  0x19   : > { %p483_p10 = por %p482_p8, %p481_p5 }
  0x1a   : > { %p479_p7 = pneg %p478_p4 }
  0x1c   : > { %p484_p9 = pnand %p483_p10, %p479_p7 }
  0x1e   : > { %487 = shalt.err (!%p484_p9)
}
  0x1f   : > { %s571_s29 = smov 256   ;;  %s572_s6 = smov 16  }
  0x20   : > { %427 = dma.hbm_to_vmem [thread:$0]  (!%p665_p13), %s173_s9, 512, %s175_s11, %s163_s13, %s571_s29, %s571_s29, %s572_s6  }
  0x21   : > { %p183_p2 = pnand %p408_p0, %p182_p1 }
  0x22   : > { %s686_s7 = sand.u32 (!%p183_p2), 1, %s561_s16  }
  0x23   : > { %186 = sbr.rel (%p183_p2) target bundleno = 575 (0x23f), region = 36  ;;  %s409_s8 = sshll.u32 (!%p183_p2), %s686_s7, 5 }
  0x24   : > { %s189_s10 = scalar_lea.sflag (!%p183_p2), [#allocation3], %s686_s7  ;;  %s192_s14 = scalar_lea.vmem (!%p183_p2), [#allocation2], %s409_s8 }
  0x28   : > { %548 = dma.done.wait (%p643_p6), %s189_s10, 512  }
  0x29   : > { %550 = vsyncadd (%p643_p6), %s189_s10, 4294966784  ;;  %v218_v0 = vld [vmem:[%s192_s14] sm:$0xff]  ;;  %v219_v1 = vld [vmem:[%s192_s14 + $0x8] sm:$0xff]  ;;  %v233_v8 = vlaneseq  ;;  %vm238_vm0 = vcmask 130112   ;;  %vm240_vm1 = vcmask 130048   ;;  %vm265_vm2 = vcmask 64512  }
  0x2a   : > { %v222_v2 = vadd.f32 %v219_v1, %v218_v0  ;;  %v220_v3 = vld [vmem:[%s192_s14 + $0x10] sm:$0xff]  ;;  %v221_v4 = vld [vmem:[%s192_s14 + $0x18] sm:$0xff]  ;;  %v229_v6 = vld [vmem:[%s744_s1 + $0x8] sm:$0xff]  ;;  %s217_s25 = scalar_lea.vmem [#allocation5], %s409_s8  ;;  %s419_s30 = sshll.u32 %s621_s19, 5 }
  0x2b   : > { %v225_v5 = vadd.f32 %v221_v4, %v220_v3  ;;  %257 = vmatpush.msra.mxu0 %v229_v6  ;;  %v228_v7 = vld [vmem:[%s744_s1] sm:$0xff]  ;;  %v234_v10 = vand.u32 127, %v233_v8  ;;  %v294_v21 = vshrl.u32 %v233_v8, 7  ;;  %s325_s6 = scalar_lea.hbm %s747_s4, %s419_s30  ;;  %s326_s10 = sshll.u32 %s217_s25, 4  ;;  %s327_s10 = int_to_ptr.vmem [resolvable:$true] %s326_s10 }
  0x2c   : > { %223 = vadd.xlane.f32.xlu0 %v222_v2  ;;  %v264_v16 = vld [vmem:[%s746_s3] sm:$0xff]  ;;  %s328_s14 = sshll.u32 %s325_s6, 4  ;;  %s314_s9 = scalar_lea.sflag [#allocation4], %s686_s7  ;;  %s329_s14 = int_to_ptr.hbm [resolvable:$true] %s328_s14 }
  0x2d   : > { %258 = vmatpush.msra.mxu0 %v228_v7  ;;  %v236_v11 = vadd.s32 4294967288, %v234_v10  ;;  %284 = vmatpush.msra.mxu1 %v264_v16  ;;  %v230_v17 = vld [vmem:[%s745_s2] sm:$0x1]  ;;  %v301_v22 = vadd.s32 8, %v294_v21  ;;  %s517_s11 = sshra.s32 %s329_s14, 4  ;;  %s523_s13 = scalar_lea.hbm %s747_s4, 64  ;;  %s518_s11 = int_to_ptr.hbm [resolvable:$true] %s517_s11 }
  0x2e   : > { %470 = vset.pattern.permute.xlu1 %v294_v21  ;;  %s519_s8 = scalar_lea.hbm %s518_s11, 32  ;;  %p524_p0 = scmp.lt.s32.totalorder %s518_s11, %s747_s4 }
  0x2f   : > { %472 = vset.pattern.permute.xlu0 %v301_v22  ;;  %p520_p6 = scmp.ne.s32.totalorder %s518_s11, %s519_s8  ;;  %p525_p1 = scmp.lt.s32.totalorder %s523_s13, %s519_s8 }
  0x31   : > { %p521_p9 = pnand %p520_p6, %p650_p11  ;;  %p526_p3 = por %p525_p1, %p524_p0 }
  0x33   : > { %p522_p13 = pneg %p521_p9 }
  0x34   : > { %226 = vadd.xlane.f32.xlu0 %v225_v5 }
  0x35   : > { %p527_p4 = pnand %p526_p3, %p522_p13 }
  0x9f   : > { %v224_v9 = vpop.xlane.xlu0 %223 }
  0xa0   : > { %v235_v13 = vperm.slane %v224_v9, %v234_v10 }
  0xa7   : > { %v227_v12 = vpop.xlane.xlu0 %226 }
  0xa8   : > { %v237_v14 = vperm.slane %v227_v12, %v236_v11 }
  0xaa   : > { %v239_v15 = vsel %vm238_vm0, %v237_v14, %v235_v13 }
  0xab   : > { %411 = vmatmul.msk.f32.vlgmr.msra.gmra.mxu0 %vm240_vm1, %v239_v15 }
 0x128   : > { %v260_v18 = vpop.f32.mrf.mxu0 }
 0x129   : > { %v261_v19 = vadd.f32 %v260_v18, %v230_v17 }
 0x12b   : > { %v263_v20 = vmax.f32 %v261_v19, 0.0 }
 0x12d   : > { %412 = vmatmul.msk.f32.vlgmr.msra.gmra.mxu1 %vm265_vm2, %v263_v20 }
 0x1aa   : > { %v286_v23 = vpop.f32.mrf.mxu1 }
 0x1ab   : > { %v287_v24 = vadd.f32 3.0, %v286_v23 }
 0x1ad   : > { %v289_v25 = vmul.f32 0.16666667, %v287_v24 }
 0x1af   : > { %v290_v26 = vmax.f32 %v289_v25, 0.0 }
 0x1b1   : > { %v291_v27 = vmin.f32 %v290_v26, 1.0 }
 0x1b3   : > { %v292_v28 = vperm.slane %v291_v27, 0 }
 0x1b5   : > { %297 = vperm.xlu1 %470, %v292_v28  }
 0x1bd   : > { %471 = vset.pattern.permute.xlu1 %v301_v22 }
 0x1c5   : > { %303 = vperm.xlu1 %471, %v292_v28  }
 0x227   : > { %v298_v29 = vpop.permute.xlu1 %297 }
 0x228   : > { %v305_v30 = vmul.f32 %v298_v29, %v218_v0  ;;  %v306_v31 = vmul.f32 %v298_v29, %v219_v1 }
 0x22a   : > { %309 = vst [vmem:[%s217_s25] sm:$0xff] %v305_v30 }
 0x22b   : > { %310 = vst [vmem:[%s217_s25 + $0x8] sm:$0xff] %v306_v31 }
 0x237   : > { %v304_v32 = vpop.permute.xlu1 %303 }
 0x238   : > { %v307_v33 = vmul.f32 %v304_v32, %v220_v3  ;;  %v308_v34 = vmul.f32 %v304_v32, %v221_v4 }
 0x23a   : > { %311 = vst [vmem:[%s217_s25 + $0x10] sm:$0xff] %v307_v33 }
 0x23b   : > { %312 = vst [vmem:[%s217_s25 + $0x18] sm:$0xff] %v308_v34 }
 0x23c   : > { %530 = shalt.err (!%p527_p4)
}
 0x23d   : > { %s573_s7 = smov 256   ;;  %s574_s22 = smov 16  }
 0x23e   : > { %422 = dma.vmem_to_hbm [thread:$0]  (%p650_p11), %s327_s10, 512, %s329_s14, %s314_s9, %s573_s7, %s573_s7, %s574_s22  }
 0x23f PF: > { %s343_s23 = sand.u32 1, %s557_s15   ;;  %p753_p7 = scmp.ge.s32.totalorder %s569_s18, 2 }
 0x240   : > { %s344_s25 = scalar_lea.sflag [#allocation4], %s343_s23 }
 0x241   : > { %p429_p5 = pnand %p753_p7, %p654_p12 }
 0x243   : > { %p430_p8 = pneg %p429_p5 }
 0x245   : > { %552 = dma.done.wait (%p430_p8), %s344_s25, 512  }
 0x246   : > { %554 = vsyncadd (%p430_p8), %s344_s25, 4294966784  ;;  %p17_p10 = scmp.ge.s32.totalorder %s625_s21, 4   ;;  %s754_s15 = smov %s561_s16 }
 0x247   : > { %s755_s16 = smov %s565_s17  ;;  %s756_s17 = smov %s637_s24 }
 0x248   : > { %s757_s18 = smov %s625_s21  ;;  %19 = sbr.rel (!%p17_p10) target bundleno = 5 (0x5), region = 81 }
 0x24d   :  { %350 = vsyncpa [#allocation3], 1 }
 0x24e   :  { %352 = vsyncpa [#allocation3 + $0x1], 1 }
 0x24f   :  { %353 = vsyncpa [#allocation4], 1 }
 0x250   :  { %355 = vsyncpa [#allocation4 + $0x1], 1 }

</bundles_post_ra>
